<compile_context>
chip_gen: v5e
topology: v5e:2x2
jax: 0.10.0
libtpu: 0.0.40
codegen_flags: <defaults>
</compile_context>

<pallas_src>
import functools

import jax
import jax.numpy as jnp
from jax.experimental import pallas as pl
from jax.experimental.pallas import tpu as pltpu


def _round_up(x, m):
    return (x + m - 1) // m * m


# ---------------------------------------------------------------------------
# Kernel
# ---------------------------------------------------------------------------
def object_encoder_kernel(parts_ref, idx_ref, pe_pack_ref, prop_pack_ref, out_ref,
                          *, n_parts, d_pe, k_task, k_os, v_obj):
    """One batch tile of the full ObjectEncoder forward.

    parts_ref    : (TB, 2N)           raw part coordinates (same memory as torch .view)
    idx_ref      : (TB, 3)   int32    [task, object_class, state] per row
    pe_pack_ref  : (2N+1, NP_pad)     rows 0:2N block-diag part-encoder weight,
                                      row 2N = tiled part-encoder bias
    prop_pack_ref: (Kt+Kos+P+1, 128)  task table / folded obj+state tables / W_prop_p
                                      / bias; columns [0:Dt]=task, [Dt:Dt+E]=obj-enc, 0 pad
    out_ref      : (TB, 128)          [task_emb | relu(object_prop) | zeros] (lane-dense)
    """
    tb = out_ref.shape[0]
    two_n = 2 * n_parts

    # ---- part encoder: ReLU(parts @ W_blockdiag + b) -> (TB, N*P), one MXU dot
    w_bd = pe_pack_ref[0:two_n, :]
    b_bd = pe_pack_ref[two_n:two_n + 1, :].astype(jnp.float32)
    pe = jnp.dot(parts_ref[...], w_bd, preferred_element_type=jnp.float32) + b_bd
    pe = jnp.maximum(pe, 0.0)

    # ---- max pool over parts: unrolled VPU max over static lane windows
    pooled = pe[:, 0:d_pe]
    for n in range(1, n_parts):
        pooled = jnp.maximum(pooled, pe[:, n * d_pe:(n + 1) * d_pe])       # (TB, P)

    # ---- fused embedding gathers: one-hot (int compare) @ folded tables (MXU)
    idx = idx_ref[...]                               # (TB, 3) int32
    task_idx = idx[:, 0:1]
    obj_idx = idx[:, 1:2]
    state_idx = idx[:, 2:3] + v_obj                  # state rows sit right after object rows

    cdt = prop_pack_ref.dtype                        # MXU operand dtype (f32 or bf16)
    lane_t = jax.lax.broadcasted_iota(jnp.int32, (tb, k_task), 1)
    onehot_task = (lane_t == task_idx).astype(cdt)                         # (TB, Kt)
    lane_os = jax.lax.broadcasted_iota(jnp.int32, (tb, k_os), 1)
    onehot_os = jnp.logical_or(lane_os == obj_idx,
                               lane_os == state_idx).astype(cdt)           # (TB, Kos)

    t_tab = prop_pack_ref[0:k_task, :]                                     # task table
    os_tab = prop_pack_ref[k_task:k_task + k_os, :]                        # folded obj/state
    w_p = prop_pack_ref[k_task + k_os:k_task + k_os + d_pe, :]             # W_prop (parts)
    b_row = prop_pack_ref[k_task + k_os + d_pe:
                          k_task + k_os + d_pe + 1, :].astype(jnp.float32)

    # Object propagation. Padded / task columns of these weights are zero, so
    # ReLU leaves them at 0 and the final sum is exactly concat(task, obj_enc).
    z = (jnp.dot(onehot_os, os_tab, preferred_element_type=jnp.float32)
         + jnp.dot(pooled.astype(cdt), w_p, preferred_element_type=jnp.float32)
         + b_row)
    obj_enc = jnp.maximum(z, 0.0)
    task_part = jnp.dot(onehot_task, t_tab, preferred_element_type=jnp.float32)

    out_ref[...] = (task_part + obj_enc).astype(out_ref.dtype)             # lane-dense store


# ---------------------------------------------------------------------------
# One-time parameter packing (hoisted out of the forward path)
# ---------------------------------------------------------------------------
def pack_object_encoder_params(params, n_parts, compute_dtype=jnp.float32):
    """Pack ObjectEncoder parameters for the fused kernel.

    compute_dtype: jnp.bfloat16 is recommended on v6e/v7x (halves operand
    DMA/VMEM; accumulation in-kernel stays f32). Keep f32 on v5e or when exact
    f32 parity is required (as in the demo below).
    """
    w_pe = jnp.asarray(params["w_pe"], jnp.float32)                 # (2, P)
    b_pe = jnp.asarray(params["b_pe"], jnp.float32).reshape(1, -1)  # (1, P)
    p = w_pe.shape[1]
    t_tab = jnp.asarray(params["task_emb"], jnp.float32)
    o_tab = jnp.asarray(params["object_emb"], jnp.float32)
    s_tab = jnp.asarray(params["state_emb"], jnp.float32)
    w_os = jnp.asarray(params["w_prop_os"], jnp.float32)            # (Do+Ds, E)
    w_pp = jnp.asarray(params["w_prop_p"], jnp.float32)             # (P, E)
    b_pr = jnp.asarray(params["b_prop"], jnp.float32).reshape(1, -1)

    v_task, d_task = t_tab.shape
    v_obj, d_obj = o_tab.shape
    v_state, d_state = s_tab.shape
    e = b_pr.shape[1]

    # --- part encoder as a block-diagonal dense matmul weight (cols padded to 128)
    np_real = n_parts * p
    np_pad = _round_up(np_real, 128)
    w_bd = jnp.kron(jnp.eye(n_parts, dtype=jnp.float32), w_pe)      # (2N, N*P)
    b_bd = jnp.tile(b_pe, (1, n_parts))                             # (1, N*P)
    pe_pack = jnp.zeros((2 * n_parts + 1, np_pad), jnp.float32)
    pe_pack = pe_pack.at[:2 * n_parts, :np_real].set(w_bd)
    pe_pack = pe_pack.at[2 * n_parts:, :np_real].set(b_bd)

    # --- propagation weights with embedding tables folded in, lane-dense columns
    out_cols = _round_up(d_task + e, 128)
    k_task = _round_up(v_task, 8)
    k_os = _round_up(v_obj + v_state, 8)
    ow = o_tab @ w_os[:d_obj]                        # fold object gather with its W slice
    sw = s_tab @ w_os[d_obj:d_obj + d_state]         # fold state gather with its W slice
    rows = k_task + k_os + p + 1                     # slice starts 0/k_task/k_task+k_os: 8-aligned
    prop_pack = jnp.zeros((rows, out_cols), jnp.float32)
    prop_pack = prop_pack.at[:v_task, :d_task].set(t_tab)
    prop_pack = prop_pack.at[k_task:k_task + v_obj, d_task:d_task + e].set(ow)
    prop_pack = prop_pack.at[k_task + v_obj:k_task + v_obj + v_state,
                             d_task:d_task + e].set(sw)
    prop_pack = prop_pack.at[k_task + k_os:k_task + k_os + p,
                             d_task:d_task + e].set(w_pp)
    prop_pack = prop_pack.at[rows - 1:rows, d_task:d_task + e].set(b_pr)

    return {
        "pe_pack": pe_pack.astype(compute_dtype),
        "prop_pack": prop_pack.astype(compute_dtype),
        "n_parts": int(n_parts), "d_pe": int(p),
        "d_task": int(d_task), "d_obj_enc": int(e),
        "v_obj": int(v_obj), "k_task": int(k_task), "k_os": int(k_os),
    }


def _pick_batch_tile(b_pad, max_tb=512):
    """Largest multiple-of-8 divisor of b_pad (<= max_tb), preferring >= 2 grid
    programs so both v7x TensorCores get work (on single-TC v5e/v6e the extra
    grid step costs ~0.35us, negligible). b_pad is already a multiple of 8."""
    cands = [t for t in range(8, min(b_pad, max_tb) + 1, 8) if b_pad % t == 0]
    if not cands:
        return b_pad
    multi = [t for t in cands if b_pad // t >= 2]
    return max(multi) if multi else max(cands)


# ---------------------------------------------------------------------------
# Forward wrapper
# ---------------------------------------------------------------------------
def object_encoder_forward(tasks, object_classes, states, parts, packed,
                           pooling_method="max"):
    assert pooling_method == "max", "only 'max' pooling is implemented (as in forward)"
    n_parts = packed["n_parts"]
    d_task, d_enc = packed["d_task"], packed["d_obj_enc"]
    B = parts.shape[0]
    assert parts.shape[1] == 2 * n_parts, (parts.shape, n_parts)

    compute_dtype = packed["pe_pack"].dtype
    parts = parts.astype(compute_dtype)                        # (B, 2N), lane-dense
    idx = jnp.stack([tasks.astype(jnp.int32),
                     object_classes.astype(jnp.int32),
                     states.astype(jnp.int32)], axis=1)        # (B, 3)

    b_pad = _round_up(B, 8)
    if b_pad != B:                                             # pad + mask-by-slice (no garbage
        parts = jnp.pad(parts, ((0, b_pad - B), (0, 0)))       # indices: padded rows use row 0)
        idx = jnp.pad(idx, ((0, b_pad - B), (0, 0)))

    tb = _pick_batch_tile(b_pad)
    grid = (b_pad // tb,)
    out_cols = packed["prop_pack"].shape[1]                    # padded to 128: lane-dense store

    kernel = functools.partial(
        object_encoder_kernel, n_parts=n_parts, d_pe=packed["d_pe"],
        k_task=packed["k_task"], k_os=packed["k_os"], v_obj=packed["v_obj"])

    out = pl.pallas_call(
        kernel,
        out_shape=jax.ShapeDtypeStruct((b_pad, out_cols), jnp.float32),
        grid=grid,
        in_specs=[
            pl.BlockSpec((tb, 2 * n_parts), lambda i: (i, 0)),        # batch-tiled parts
            pl.BlockSpec((tb, 3), lambda i: (i, 0)),                  # batch-tiled indices
            pl.BlockSpec(packed["pe_pack"].shape, lambda i: (0, 0)),  # resident weights
            pl.BlockSpec(packed["prop_pack"].shape, lambda i: (0, 0)),
        ],
        out_specs=pl.BlockSpec((tb, out_cols), lambda i: (i, 0)),
        compiler_params=pltpu.CompilerParams(
            dimension_semantics=("parallel",)),                       # megacore on v7x
    )(parts, idx, packed["pe_pack"], packed["prop_pack"])

    # concat(task_emb, object_encodes) already happened in-kernel (disjoint columns).
    return out[:B, :d_task + d_enc]


# ---------------------------------------------------------------------------
# Pure-JAX reference (mirrors the PyTorch module)
# ---------------------------------------------------------------------------
def reference_forward(tasks, object_classes, states, parts, params):
    B = parts.shape[0]
    p3 = parts.reshape(B, -1, 2).astype(jnp.float32)
    pe = jnp.maximum(jnp.einsum("bnc,cp->bnp", p3, params["w_pe"])
                     + params["b_pe"][None], 0.0)
    parts_enc = jnp.max(pe, axis=1)
    te = params["task_emb"][tasks]
    oe = params["object_emb"][object_classes]
    se = params["state_emb"][states]
    feat = jnp.concatenate([oe, se, parts_enc], axis=1)
    w = jnp.concatenate([params["w_prop_os"], params["w_prop_p"]], axis=0)
    obj_enc = jnp.maximum(feat @ w + params["b_prop"][0], 0.0)
    return jnp.concatenate([te, obj_enc], axis=1)


if __name__ == "__main__":
    # Small, deterministic shapes consistent with the module.
    B = 8                 # batch
    N_PARTS = 16          # number of (x, y) parts per object
    TASK_VOCAB, OBJ_VOCAB, STATE_VOCAB = 10, 12, 6
    TASK_DIM, OBJ_DIM, STATE_DIM = 16, 16, 16
    PART_ENC_DIM, OBJ_ENC_DIM = 32, 32

    key = jax.random.PRNGKey(0)
    ks = jax.random.split(key, 10)

    params = {
        # part encoder (Linear(2, P) + ReLU)
        "w_pe": 0.1 * jax.random.normal(ks[0], (2, PART_ENC_DIM), jnp.float32),
        "b_pe": 0.1 * jax.random.normal(ks[1], (1, PART_ENC_DIM), jnp.float32),
        # embedding tables
        "task_emb": 0.1 * jax.random.normal(ks[2], (TASK_VOCAB, TASK_DIM), jnp.float32),
        "object_emb": 0.1 * jax.random.normal(ks[3], (OBJ_VOCAB, OBJ_DIM), jnp.float32),
        "state_emb": 0.1 * jax.random.normal(ks[4], (STATE_VOCAB, STATE_DIM), jnp.float32),
        # object_propagation: Linear(Do + Ds + P, E), weight split along input dim
        "w_prop_os": 0.1 * jax.random.normal(ks[5], (OBJ_DIM + STATE_DIM, OBJ_ENC_DIM), jnp.float32),
        "w_prop_p": 0.1 * jax.random.normal(ks[6], (PART_ENC_DIM, OBJ_ENC_DIM), jnp.float32),
        "b_prop": 0.1 * jax.random.normal(ks[7], (1, OBJ_ENC_DIM), jnp.float32),
    }

    tasks = jax.random.randint(ks[8], (B,), 0, TASK_VOCAB, jnp.int32)
    object_classes = jax.random.randint(ks[8], (B,), 0, OBJ_VOCAB, jnp.int32)
    states = jax.random.randint(ks[8], (B,), 0, STATE_VOCAB, jnp.int32)
    parts = jax.random.normal(ks[9], (B, 2 * N_PARTS), jnp.float32)

    # One-time packing (hoisted out of the forward path). f32 here for exact
    # parity with the reference; use compute_dtype=jnp.bfloat16 on v6e/v7x.
    packed = pack_object_encoder_params(params, N_PARTS, compute_dtype=jnp.float32)

    out = object_encoder_forward(tasks, object_classes, states, parts, packed)
    out = jax.block_until_ready(out)

    ref = reference_forward(tasks, object_classes, states, parts, params)
    assert out.shape == (B, TASK_DIM + OBJ_ENC_DIM), out.shape
    assert jnp.allclose(out, ref, atol=1e-4, rtol=1e-4), "mismatch vs reference"

    print("KERNEL_OK")
</pallas_src>

<mosaic_0001>
module attributes {stable_mosaic.version = 11 : i64} {
  func.func @object_encoder_kernel(%arg0: i32, %arg1: memref<8x32xf32, #tpu.memory_space<vmem>>, %arg2: memref<8x3xi32, #tpu.memory_space<vmem>>, %arg3: memref<33x512xf32, #tpu.memory_space<vmem>>, %arg4: memref<73x128xf32, #tpu.memory_space<vmem>>, %arg5: memref<8x128xf32, #tpu.memory_space<vmem>>) attributes {dimension_semantics = [#tpu.dimension_semantics<parallel>], iteration_bounds = array<i64: 1>, scalar_prefetch = 0 : i64, scratch_operands = 0 : i64, tpu.core_type = #tpu.core_type<tc>, window_params = [{transform_indices = @transform_0, window_bounds = array<i64: 8, 32>}, {transform_indices = @transform_1, window_bounds = array<i64: 8, 3>}, {pipeline_mode = #tpu.pipeline_mode<synchronous>, transform_indices = @transform_2, window_bounds = array<i64: 33, 512>}, {pipeline_mode = #tpu.pipeline_mode<synchronous>, transform_indices = @transform_3, window_bounds = array<i64: 73, 128>}, {transform_indices = @transform_4, window_bounds = array<i64: 8, 128>}]} {
    %c0 = arith.constant 0 : index
    %c0_0 = arith.constant 0 : index
    %0 = vector.load %arg3[%c0, %c0_0] : memref<33x512xf32, #tpu.memory_space<vmem>>, vector<32x512xf32>
    %c32 = arith.constant 32 : index
    %c0_1 = arith.constant 0 : index
    %1 = vector.load %arg3[%c32, %c0_1] : memref<33x512xf32, #tpu.memory_space<vmem>>, vector<1x512xf32>
    %c0_2 = arith.constant 0 : index
    %c0_3 = arith.constant 0 : index
    %2 = vector.load %arg1[%c0_2, %c0_3] : memref<8x32xf32, #tpu.memory_space<vmem>>, vector<8x32xf32>
    %cst = arith.constant dense<0.000000e+00> : vector<8x512xf32>
    %3 = tpu.matmul %2, %0, %cst {dimension_numbers = #tpu.dot_dimension_numbers<[1], [0], [0], [1], [0, 0, 1, 1], [], []>} : vector<8x32xf32>, vector<32x512xf32>, vector<8x512xf32> -> vector<8x512xf32>
    %4 = vector.broadcast %1 : vector<1x512xf32> to vector<8x512xf32>
    %5 = arith.addf %3, %4 : vector<8x512xf32>
    %cst_4 = arith.constant 0.000000e+00 : f32
    %6 = vector.broadcast %cst_4 : f32 to vector<8x512xf32>
    %7 = arith.maximumf %5, %6 : vector<8x512xf32>
    %8 = vector.extract_strided_slice %7 {offsets = [0, 0], sizes = [8, 32], strides = [1, 1]} : vector<8x512xf32> to vector<8x32xf32>
    %9 = vector.extract_strided_slice %7 {offsets = [0, 32], sizes = [8, 32], strides = [1, 1]} : vector<8x512xf32> to vector<8x32xf32>
    %10 = arith.maximumf %8, %9 : vector<8x32xf32>
    %11 = vector.extract_strided_slice %7 {offsets = [0, 64], sizes = [8, 32], strides = [1, 1]} : vector<8x512xf32> to vector<8x32xf32>
    %12 = arith.maximumf %10, %11 : vector<8x32xf32>
    %13 = vector.extract_strided_slice %7 {offsets = [0, 96], sizes = [8, 32], strides = [1, 1]} : vector<8x512xf32> to vector<8x32xf32>
    %14 = arith.maximumf %12, %13 : vector<8x32xf32>
    %15 = vector.extract_strided_slice %7 {offsets = [0, 128], sizes = [8, 32], strides = [1, 1]} : vector<8x512xf32> to vector<8x32xf32>
    %16 = arith.maximumf %14, %15 : vector<8x32xf32>
    %17 = vector.extract_strided_slice %7 {offsets = [0, 160], sizes = [8, 32], strides = [1, 1]} : vector<8x512xf32> to vector<8x32xf32>
    %18 = arith.maximumf %16, %17 : vector<8x32xf32>
    %19 = vector.extract_strided_slice %7 {offsets = [0, 192], sizes = [8, 32], strides = [1, 1]} : vector<8x512xf32> to vector<8x32xf32>
    %20 = arith.maximumf %18, %19 : vector<8x32xf32>
    %21 = vector.extract_strided_slice %7 {offsets = [0, 224], sizes = [8, 32], strides = [1, 1]} : vector<8x512xf32> to vector<8x32xf32>
    %22 = arith.maximumf %20, %21 : vector<8x32xf32>
    %23 = vector.extract_strided_slice %7 {offsets = [0, 256], sizes = [8, 32], strides = [1, 1]} : vector<8x512xf32> to vector<8x32xf32>
    %24 = arith.maximumf %22, %23 : vector<8x32xf32>
    %25 = vector.extract_strided_slice %7 {offsets = [0, 288], sizes = [8, 32], strides = [1, 1]} : vector<8x512xf32> to vector<8x32xf32>
    %26 = arith.maximumf %24, %25 : vector<8x32xf32>
    %27 = vector.extract_strided_slice %7 {offsets = [0, 320], sizes = [8, 32], strides = [1, 1]} : vector<8x512xf32> to vector<8x32xf32>
    %28 = arith.maximumf %26, %27 : vector<8x32xf32>
    %29 = vector.extract_strided_slice %7 {offsets = [0, 352], sizes = [8, 32], strides = [1, 1]} : vector<8x512xf32> to vector<8x32xf32>
    %30 = arith.maximumf %28, %29 : vector<8x32xf32>
    %31 = vector.extract_strided_slice %7 {offsets = [0, 384], sizes = [8, 32], strides = [1, 1]} : vector<8x512xf32> to vector<8x32xf32>
    %32 = arith.maximumf %30, %31 : vector<8x32xf32>
    %33 = vector.extract_strided_slice %7 {offsets = [0, 416], sizes = [8, 32], strides = [1, 1]} : vector<8x512xf32> to vector<8x32xf32>
    %34 = arith.maximumf %32, %33 : vector<8x32xf32>
    %35 = vector.extract_strided_slice %7 {offsets = [0, 448], sizes = [8, 32], strides = [1, 1]} : vector<8x512xf32> to vector<8x32xf32>
    %36 = arith.maximumf %34, %35 : vector<8x32xf32>
    %37 = vector.extract_strided_slice %7 {offsets = [0, 480], sizes = [8, 32], strides = [1, 1]} : vector<8x512xf32> to vector<8x32xf32>
    %38 = arith.maximumf %36, %37 : vector<8x32xf32>
    %c0_5 = arith.constant 0 : index
    %c0_6 = arith.constant 0 : index
    %39 = vector.load %arg2[%c0_5, %c0_6] : memref<8x3xi32, #tpu.memory_space<vmem>>, vector<8x3xi32>
    %40 = vector.extract_strided_slice %39 {offsets = [0, 0], sizes = [8, 1], strides = [1, 1]} : vector<8x3xi32> to vector<8x1xi32>
    %41 = vector.extract_strided_slice %39 {offsets = [0, 1], sizes = [8, 1], strides = [1, 1]} : vector<8x3xi32> to vector<8x1xi32>
    %42 = vector.extract_strided_slice %39 {offsets = [0, 2], sizes = [8, 1], strides = [1, 1]} : vector<8x3xi32> to vector<8x1xi32>
    %c12_i32 = arith.constant 12 : i32
    %43 = vector.broadcast %c12_i32 : i32 to vector<8x1xi32>
    %44 = arith.addi %42, %43 : vector<8x1xi32>
    %45 = tpu.iota {dimensions = array<i32: 1>} : vector<8x16xi32>
    %46 = vector.broadcast %40 : vector<8x1xi32> to vector<8x16xi32>
    %47 = arith.cmpi eq, %45, %46 : vector<8x16xi32>
    %48 = arith.extui %47 : vector<8x16xi1> to vector<8x16xi32>
    %49 = arith.sitofp %48 : vector<8x16xi32> to vector<8x16xf32>
    %50 = tpu.iota {dimensions = array<i32: 1>} : vector<8x24xi32>
    %51 = vector.broadcast %41 : vector<8x1xi32> to vector<8x24xi32>
    %52 = arith.cmpi eq, %50, %51 : vector<8x24xi32>
    %53 = vector.broadcast %44 : vector<8x1xi32> to vector<8x24xi32>
    %54 = arith.cmpi eq, %50, %53 : vector<8x24xi32>
    %55 = arith.ori %52, %54 : vector<8x24xi1>
    %56 = arith.extui %55 : vector<8x24xi1> to vector<8x24xi32>
    %57 = arith.sitofp %56 : vector<8x24xi32> to vector<8x24xf32>
    %c0_7 = arith.constant 0 : index
    %c0_8 = arith.constant 0 : index
    %58 = vector.load %arg4[%c0_7, %c0_8] : memref<73x128xf32, #tpu.memory_space<vmem>>, vector<16x128xf32>
    %c16 = arith.constant 16 : index
    %c0_9 = arith.constant 0 : index
    %59 = vector.load %arg4[%c16, %c0_9] : memref<73x128xf32, #tpu.memory_space<vmem>>, vector<24x128xf32>
    %c40 = arith.constant 40 : index
    %c0_10 = arith.constant 0 : index
    %60 = vector.load %arg4[%c40, %c0_10] : memref<73x128xf32, #tpu.memory_space<vmem>>, vector<32x128xf32>
    %c72 = arith.constant 72 : index
    %c0_11 = arith.constant 0 : index
    %61 = vector.load %arg4[%c72, %c0_11] : memref<73x128xf32, #tpu.memory_space<vmem>>, vector<1x128xf32>
    %cst_12 = arith.constant dense<0.000000e+00> : vector<8x128xf32>
    %62 = tpu.matmul %57, %59, %cst_12 {dimension_numbers = #tpu.dot_dimension_numbers<[1], [0], [0], [1], [0, 0, 1, 1], [], []>} : vector<8x24xf32>, vector<24x128xf32>, vector<8x128xf32> -> vector<8x128xf32>
    %cst_13 = arith.constant dense<0.000000e+00> : vector<8x128xf32>
    %63 = tpu.matmul %38, %60, %cst_13 {dimension_numbers = #tpu.dot_dimension_numbers<[1], [0], [0], [1], [0, 0, 1, 1], [], []>} : vector<8x32xf32>, vector<32x128xf32>, vector<8x128xf32> -> vector<8x128xf32>
    %64 = arith.addf %62, %63 : vector<8x128xf32>
    %65 = vector.broadcast %61 : vector<1x128xf32> to vector<8x128xf32>
    %66 = arith.addf %64, %65 : vector<8x128xf32>
    %cst_14 = arith.constant 0.000000e+00 : f32
    %67 = vector.broadcast %cst_14 : f32 to vector<8x128xf32>
    %68 = arith.maximumf %66, %67 : vector<8x128xf32>
    %cst_15 = arith.constant dense<0.000000e+00> : vector<8x128xf32>
    %69 = tpu.matmul %49, %58, %cst_15 {dimension_numbers = #tpu.dot_dimension_numbers<[1], [0], [0], [1], [0, 0, 1, 1], [], []>} : vector<8x16xf32>, vector<16x128xf32>, vector<8x128xf32> -> vector<8x128xf32>
    %70 = arith.addf %69, %68 : vector<8x128xf32>
    %c0_16 = arith.constant 0 : index
    %c0_17 = arith.constant 0 : index
    %71 = vector.load %arg5[%c0_16, %c0_17] : memref<8x128xf32, #tpu.memory_space<vmem>>, vector<8x128xf32>
    tpu.vector_store %arg5[%c0_16, %c0_17], %70 {strides = array<i32>} : memref<8x128xf32, #tpu.memory_space<vmem>>, vector<8x128xf32>,
    return
  }
  func.func @transform_0(%arg0: i32) -> (i32, i32) {
    %c0_i32 = arith.constant 0 : i32
    %c0_i32_0 = arith.constant 0 : i32
    return %arg0, %c0_i32 : i32, i32
  }
  func.func @transform_1(%arg0: i32) -> (i32, i32) {
    %c0_i32 = arith.constant 0 : i32
    %c0_i32_0 = arith.constant 0 : i32
    return %arg0, %c0_i32 : i32, i32
  }
  func.func @transform_2(%arg0: i32) -> (i32, i32) {
    %c0_i32 = arith.constant 0 : i32
    %c0_i32_0 = arith.constant 0 : i32
    %c0_i32_1 = arith.constant 0 : i32
    return %c0_i32, %c0_i32_0 : i32, i32
  }
  func.func @transform_3(%arg0: i32) -> (i32, i32) {
    %c0_i32 = arith.constant 0 : i32
    %c0_i32_0 = arith.constant 0 : i32
    %c0_i32_1 = arith.constant 0 : i32
    return %c0_i32, %c0_i32_0 : i32, i32
  }
  func.func @transform_4(%arg0: i32) -> (i32, i32) {
    %c0_i32 = arith.constant 0 : i32
    %c0_i32_0 = arith.constant 0 : i32
    return %arg0, %c0_i32 : i32, i32
  }
}

</mosaic_0001>

<bundles_post_ra>
// kernel: tpu_custom_call.1
= control target key start
LH: loop header
LB: loop body
LE: loop exit
PB: predicated region body
PF: predicated region fallthrough
CT: control target
= control target key end

     0   :  { %9 = vsyncpa [#allocation3], 0  ;;  %s524_s0 = inlined_call_operand.vmem [shape: f32[8,32], index: 0, kind: input, shape index: {}]   ;;  %s525_s1 = inlined_call_operand.vmem [shape: s32[8,3], index: 1, kind: input, shape index: {}]   ;;  %s526_s2 = inlined_call_operand.hbm [shape: f32[33,512], index: 2, kind: input, shape index: {}]   ;;  %s527_s3 = inlined_call_operand.hbm [shape: f32[73,128], index: 3, kind: input, shape index: {}]   ;;  %s528_s4 = inlined_call_operand.hbm [shape: f32[8,128], index: 4, kind: output, shape index: {}]  }
   0x1   :  { %10 = vsyncpa [#allocation6], 0 }
   0x2   :  { %11 = vsyncpa [#allocation4], 0  ;;  %s20_s17 = sshll.u32 %s526_s2, 4  ;;  %s449_s18 = smov [#allocation2]   ;;  %s21_s17 = int_to_ptr.hbm [resolvable:$true] %s20_s17 }
   0x3   :  { %s22_s19 = sshll.u32 %s449_s18, 4  ;;  %s33_s22 = sshll.u32 %s527_s3, 4  ;;  %s23_s19 = int_to_ptr.vmem [resolvable:$true] %s22_s19  ;;  %s34_s22 = int_to_ptr.hbm [resolvable:$true] %s33_s22 }
   0x4   :  { %s450_s23 = smov 512   ;;  %s451_s24 = smov 32  }
   0x5   :  { %28 = dma.hbm_to_vmem [thread:$0]  %s21_s17, 2560, %s23_s19, [#allocation3], %s450_s23, %s450_s23, %s451_s24  }
   0x6   :  { %s452_s25 = smov [#allocation5]   ;;  %s453_s27 = smov 128  }
   0x7   :  { %s35_s26 = sshll.u32 %s452_s25, 4  ;;  %s454_s28 = smov 8   ;;  %s36_s26 = int_to_ptr.vmem [resolvable:$true] %s35_s26 }
   0x8   :  { %41 = dma.hbm_to_vmem [thread:$0]  %s34_s22, 1280, %s36_s26, [#allocation6], %s453_s27, %s453_s27, %s454_s28  }
   0x9   :  { %443 = dma.done.wait [#allocation3], 2560  }
   0xa   :  { %444 = vsyncadd [#allocation3], 4294964736 }
   0xb   :  { %445 = dma.done.wait [#allocation6], 1280  }
   0xc   :  { %446 = vsyncadd [#allocation6], 4294966016  ;;  %v455_v0 = vmov 1   ;;  %v62_v1 = vld [vmem:[#allocation2 + $0x60] sm:$0xff]  ;;  %v63_v2 = vld [vmem:[#allocation2 + $0x68] sm:$0xff]  ;;  %vm78_vm0 = vcmask 261120   ;;  %v223_v43 = vlaneseq }
   0xd   :  { %367 = vset.pattern.permute.xlu2 %v455_v0  ;;  %v58_v3 = vld [vmem:[#allocation2 + $0x40] sm:$0xff]  ;;  %94 = vmatpush.msra.mxu0 %v62_v1  ;;  %v59_v4 = vld [vmem:[#allocation2 + $0x48] sm:$0xff]  ;;  %v64_v7 = vld [vmem:[#allocation2 + $0x70] sm:$0xff]  ;;  %v456_v22 = vmov 2   ;;  %v459_v29 = vmov 0   ;;  %v460_v57 = vmov 0.0  }
   0xe   :  { %114 = vmatpush.msra.mxu1 %v63_v2  ;;  %v54_v5 = vld [vmem:[#allocation2 + $0x20] sm:$0xff]  ;;  %v55_v6 = vld [vmem:[#allocation2 + $0x28] sm:$0xff]  ;;  %v60_v8 = vld [vmem:[#allocation2 + $0x50] sm:$0xff]  ;;  %134 = vmatpush.msra.mxu2 %v64_v7  ;;  %v224_v51 = vand.u32 127, %v223_v43  ;;  %vm302_vm2 = vcmask 130048   ;;  %vm275_vm5 = vcmask 195584  }
   0xf   :  { %95 = vmatpush.msra.mxu0 %v58_v3  ;;  %v50_v9 = vld [vmem:[#allocation2] sm:$0xff]  ;;  %v51_v10 = vld [vmem:[#allocation2 + $0x8] sm:$0xff]  ;;  %v65_v11 = vld [vmem:[#allocation2 + $0x78] sm:$0xff]  ;;  %368 = vset.pattern.permute.xlu0 %v456_v22  ;;  %s461_s5 = smov [#allocation7]   ;;  %s334_s9 = sshll.u32 %s528_s4, 4  ;;  %s335_s9 = int_to_ptr.hbm [resolvable:$true] %s334_s9 }
  0x10   :  { %115 = vmatpush.msra.mxu1 %v59_v4  ;;  %v68_v12 = vld [vmem:[%s524_s0] sm:$0xff]  ;;  %135 = vmatpush.msra.mxu2 %v60_v8  ;;  %v56_v13 = vld [vmem:[#allocation2 + $0x30] sm:$0xff]  ;;  %v61_v14 = vld [vmem:[#allocation2 + $0x58] sm:$0xff]  ;;  %s457_s0 = smov 96   ;;  %s332_s6 = sshll.u32 %s461_s5, 4  ;;  %s333_s6 = int_to_ptr.vmem [resolvable:$true] %s332_s6 }
  0x11   :  { %96 = vmatpush.msra.mxu0 %v54_v5  ;;  %154 = vmatpush.msra.mxu3 %v65_v11  ;;  %v221_v15 = vld [vmem:[%s525_s1] sm:$0xff]  ;;  %v52_v16 = vld [vmem:[#allocation2 + $0x10] sm:$0xff]  ;;  %v57_v17 = vld [vmem:[#allocation2 + $0x38] sm:$0xff]  ;;  %s458_s1 = smov 64  }
  0x12   :  { %116 = vmatpush.msra.mxu1 %v55_v6  ;;  %136 = vmatpush.msra.mxu2 %v56_v13  ;;  %v53_v18 = vld [vmem:[#allocation2 + $0x18] sm:$0xff]  ;;  %v222_v38 = vadd.s32 12, %v221_v15  ;;  %v250_v44 = vld [vmem:[#allocation5 + $0x40] sm:$0xff]  ;;  %v243_v46 = vld [vmem:[#allocation5 + $0x8] sm:$0xff] }
  0x13   :  { %97 = vmatpush.msra.mxu0 %v50_v9  ;;  %155 = vmatpush.msra.mxu3 %v61_v14  ;;  %v67_v19 = vld [vmem:[#allocation2 + $0x80] ss:$8 sm:$0xf] }
  0x14   :  { %117 = vmatpush.msra.mxu1 %v51_v10  ;;  %345 = vmatmul.msk.f32.vlgmr.msra.gmra.mxu0 %vm78_vm0, %v68_v12  ;;  %v70_v20 = vperm.slane %v67_v19, 0  ;;  %v71_v21 = vperm.slane %v67_v19, 1  ;;  %v72_v30 = vperm.slane %v67_v19, 2  ;;  %v73_v34 = vperm.slane %v67_v19, 3  ;;  %v246_v45 = vld [vmem:[#allocation5 + $0x20] sm:$0xff]  ;;  %v249_v47 = vld [vmem:[#allocation5 + $0x38] sm:$0xff] }
  0x15   :  { %346 = vmatmul.msk.f32.vlgmr.msra.gmra.mxu1 %vm78_vm0, %v68_v12  ;;  %232 = vperm.xlu2 %367, %v221_v15   ;;  %v245_v48 = vld [vmem:[#allocation5 + $0x18] sm:$0xff]  ;;  %v248_v52 = vld [vmem:[#allocation5 + $0x30] sm:$0xff]  ;;  %v242_v55 = vld [vmem:[#allocation5] sm:$0xff] }
  0x16   :  { %137 = vmatpush.msra.mxu2 %v52_v16  ;;  %156 = vmatpush.msra.mxu3 %v57_v17  ;;  %v244_v54 = vld [vmem:[#allocation5 + $0x10] sm:$0xff]  ;;  %v247_v56 = vld [vmem:[#allocation5 + $0x28] sm:$0xff] }
  0x17   :  { %347 = vmatmul.msk.f32.vlgmr.msra.gmra.mxu2 %vm78_vm0, %v68_v12  ;;  %267 = vmatpush.msrb.mxu0 %v250_v44 }
  0x18   :  { %157 = vmatpush.msra.mxu3 %v53_v18  ;;  %292 = vmatpush.msrb.mxu1 %v246_v45 }
  0x19   :  { %348 = vmatmul.msk.f32.vlgmr.msra.gmra.mxu3 %vm78_vm0, %v68_v12  ;;  %320 = vmatpush.msrb.mxu2 %v243_v46 }
  0x1a   :  { %268 = vmatpush.msrb.mxu0 %v249_v47  ;;  %293 = vmatpush.msrb.mxu1 %v245_v48 }
  0x1b   :  { %321 = vmatpush.msrb.mxu2 %v242_v55 }
  0x1c   :  { %269 = vmatpush.msrb.mxu0 %v248_v52  ;;  %294 = vmatpush.msrb.mxu1 %v244_v54 }
  0x1d   :  { %369 = vset.pattern.permute.xlu2 %v459_v29 }
  0x1e   :  { %270 = vmatpush.msrb.mxu0 %v247_v56 }
  0x6f   :  { %v233_v39 = vpop.permute.xlu2 %232 }
  0x70   :  { %vm234_vm3 = vcmp.eq.s32.totalorder %v224_v51, %v233_v39 }
  0x91   :  { %v99_v23 = vpop.f32.mrf.mxu0 }
  0x92   :  { %v119_v24 = vpop.f32.mrf.mxu1  ;;  %v100_v25 = vadd.f32 %v99_v23, %v70_v20  ;;  %v370_v20 = vld [vmem:[#allocation5 + $0x48] ss:$0 sm:$0xff] }
  0x93   :  { %v120_v26 = vadd.f32 %v119_v24, %v71_v21 }
  0x94   :  { %v504_v27 = vmax.f32 %v100_v25, 0.0 }
  0x95   :  { %v506_v28 = vmax.f32 %v120_v26, 0.0 }
  0x96   :  { %175 = vrot.lane.b32.xlu1 %v504_v27, %s451_s24  ;;  %167 = vrot.lane.b32.xlu0 %v504_v27, %s457_s0 }
  0x97   :  { %185 = vrot.lane.b32.xlu2 %v506_v28, %s458_s1 }
  0x9a   :  { %v139_v31 = vpop.f32.mrf.mxu2 }
  0x9b   :  { %v140_v32 = vadd.f32 %v139_v31, %v72_v30 }
  0x9c   :  { %v159_v35 = vpop.f32.mrf.mxu3 }
  0x9d   :  { %v164_v33 = vmax.f32 %v140_v32, 0.0  ;;  %v160_v36 = vadd.f32 %v159_v35, %v73_v34 }
  0x9e   :  { %181 = vrot.lane.b32.xlu1 %v506_v28, %s457_s0  ;;  %171 = vrot.lane.b32.xlu0 %v504_v27, %s458_s1 }
  0x9f   :  { %189 = vrot.lane.b32.xlu2 %v506_v28, %s451_s24  ;;  %v165_v37 = vmax.f32 %v160_v36, 0.0 }
  0xa6   :  { %199 = vrot.lane.b32.xlu1 %v164_v33, %s458_s1  ;;  %195 = vrot.lane.b32.xlu0 %v164_v33, %s457_s0 }
  0xa7   :  { %203 = vrot.lane.b32.xlu2 %v164_v33, %s451_s24 }
  0xae   :  { %213 = vrot.lane.b32.xlu1 %v165_v37, %s458_s1  ;;  %209 = vrot.lane.b32.xlu0 %v165_v37, %s457_s0 }
  0xaf   :  { %226 = vperm.xlu2 %369, %v221_v15  }
  0xb6   :  { %217 = vrot.lane.b32.xlu1 %v165_v37, %s451_s24  ;;  %236 = vperm.xlu0 %368, %v222_v38  }
  0xf1   :  { %v186_v40 = vpop.permute.xlu2 %185 }
  0xf9   :  { %v190_v41 = vpop.permute.xlu2 %189 }
 0x101   :  { %v204_v42 = vpop.permute.xlu2 %203 }
 0x108   :  { %v176_v49 = vpop.permute.xlu1 %175  ;;  %v168_v50 = vpop.permute.xlu0 %167 }
 0x109   :  { %v227_v53 = vpop.permute.xlu2 %226  ;;  %v170_v59 = vmax.f32 %v504_v27, %v168_v50 }
 0x10a   :  { %vm228_vm1 = vcmp.eq.s32.totalorder %v224_v51, %v227_v53 }
 0x10b   :  { %v349_v58 = vsel %vm228_vm1, 1.0, %v460_v57 }
 0x10c   :  { %353 = vmatmul.msk.f32.vlgmr.msrb.gmra.mxu2 %vm302_vm2, %v349_v58 }
 0x110   :  { %v182_v60 = vpop.permute.xlu1 %181  ;;  %v172_v61 = vpop.permute.xlu0 %171 }
 0x111   :  { %v174_v62 = vmax.f32 %v170_v59, %v172_v61 }
 0x113   :  { %v178_v63 = vmax.f32 %v174_v62, %v176_v49 }
 0x115   :  { %v179_v0 = vmax.f32 %v178_v63, %v506_v28 }
 0x117   :  { %v184_v1 = vmax.f32 %v179_v0, %v182_v60 }
 0x118   :  { %v200_v2 = vpop.permute.xlu1 %199  ;;  %v196_v3 = vpop.permute.xlu0 %195 }
 0x119   :  { %v188_v4 = vmax.f32 %v184_v1, %v186_v40 }
 0x11b   :  { %v192_v5 = vmax.f32 %v188_v4, %v190_v41 }
 0x11d   :  { %v193_v6 = vmax.f32 %v192_v5, %v164_v33 }
 0x11f   :  { %v198_v7 = vmax.f32 %v193_v6, %v196_v3 }
 0x120   :  { %v214_v8 = vpop.permute.xlu1 %213  ;;  %v210_v9 = vpop.permute.xlu0 %209 }
 0x121   :  { %v202_v10 = vmax.f32 %v198_v7, %v200_v2 }
 0x123   :  { %v206_v11 = vmax.f32 %v202_v10, %v204_v42 }
 0x125   :  { %v207_v12 = vmax.f32 %v206_v11, %v165_v37 }
 0x127   :  { %v212_v13 = vmax.f32 %v207_v12, %v210_v9 }
 0x128   :  { %v237_v14 = vpop.permute.xlu0 %236  ;;  %v218_v16 = vpop.permute.xlu1 %217 }
 0x129   :  { %v216_v15 = vmax.f32 %v212_v13, %v214_v8  ;;  %vm238_vm4 = vcmp.eq.s32.totalorder %v224_v51, %v237_v14 }
 0x12a   :  { %vm239_vm6 = vmor %vm234_vm3, %vm238_vm4 }
 0x12b   :  { %v220_v17 = vmax.f32 %v216_v15, %v218_v16  ;;  %v350_v18 = vsel %vm239_vm6, 1.0, %v460_v57 }
 0x12c   :  { %352 = vmatmul.msk.f32.vlgmr.msrb.gmra.mxu1 %vm275_vm5, %v350_v18 }
 0x12d   :  { %351 = vmatmul.msk.f32.vlgmr.msrb.gmra.mxu0 %vm78_vm0, %v220_v17 }
 0x18f   :  { %v323_v24 = vpop.f32.mrf.mxu2 }
 0x1a9   :  { %v296_v19 = vpop.f32.mrf.mxu1 }
 0x1aa   :  { %v272_v21 = vpop.f32.mrf.mxu0 }
 0x1ab   :  { %v297_v22 = vadd.f32 %v296_v19, %v272_v21 }
 0x1ad   :  { %v300_v23 = vadd.f32 %v370_v20, %v297_v22 }
 0x1af   :  { %v301_v25 = vmax.f32 %v300_v23, 0.0 }
 0x1b1   :  { %v324_v26 = vadd.f32 %v323_v24, %v301_v25 }
 0x1b3   :  { %326 = vst [vmem:[#allocation7] sm:$0xff] %v324_v26 }
 0x1b4   :  { %337 = dma.vmem_to_hbm [thread:$0]  %s333_s6, 128, %s335_s9, [#allocation4]  }
 0x1b5   :  { %447 = dma.done.wait [#allocation4], 128  }
 0x1b6   :  { %448 = vsyncadd [#allocation4], 4294967168 }
 0x1b7   :  { %342 = vsyncpa [#allocation3], 1 }
 0x1b8   :  { %343 = vsyncpa [#allocation6], 1 }
 0x1b9   :  { %344 = vsyncpa [#allocation4], 1 }

</bundles_post_ra>
